<compile_context>
chip_gen: v5e
topology: v5e:2x2
jax: 0.10.0
libtpu: 0.0.40
codegen_flags: <defaults>
</compile_context>

<pallas_src>
from functools import partial

import jax
import jax.numpy as jnp
from jax.experimental import pallas as pl
from jax.experimental.pallas import tpu as pltpu

F32 = jnp.float32
BF16 = jnp.bfloat16
_SELU_ALPHA = 1.6732632423543772
_SELU_SCALE = 1.0507009873554805


def _selu(x):
    # f32 elementwise (v5e has no bf16 VPU/EUP)
    return _SELU_SCALE * jnp.where(x > 0, x, _SELU_ALPHA * (jnp.exp(x) - 1.0))


# --------------------------------------------------------------------------- #
# Device-dependent configuration
# --------------------------------------------------------------------------- #
def _vmem_limit_bytes():
    try:
        cap = int(pltpu.get_tpu_info().vmem_capacity_bytes)
        if cap > 0:
            return int(cap * 0.8)          # ~100 MiB on v5e/v6e, ~50 MiB on v7x
    except Exception:
        pass
    return 32 * 1024 * 1024                # conservative fallback


_VMEM_LIMIT = _vmem_limit_bytes()


def _probe_single_buffer():
    """Verify pipeline_mode=pl.Buffered(1) lowers on this JAX/Mosaic build."""
    try:
        spec = pl.BlockSpec((8, 128), lambda i: (0, 0),
                            pipeline_mode=pl.Buffered(1))
    except TypeError:
        return False
    try:
        def k(x_ref, o_ref):
            o_ref[...] = x_ref[...] + 1.0
        y = pl.pallas_call(
            k, out_shape=jax.ShapeDtypeStruct((8, 128), F32),
            grid=(2,), in_specs=[spec],
            out_specs=pl.BlockSpec((8, 128), lambda i: (0, 0)))(
                jnp.zeros((8, 128), F32))
        jax.block_until_ready(y)
        return True
    except Exception:
        return False


_SINGLE_BUFFER_OK = _probe_single_buffer()


# --------------------------------------------------------------------------- #
# BlockSpec helpers
# --------------------------------------------------------------------------- #
def _const_spec(shape):
    # Full-array block, same block index every grid step -> resident; single-
    # buffered when supported (the block index never changes across layers).
    nd = len(shape)
    idx = lambda l: (0,) * nd
    if _SINGLE_BUFFER_OK:
        return pl.BlockSpec(tuple(shape), idx, pipeline_mode=pl.Buffered(1))
    return pl.BlockSpec(tuple(shape), idx)


def _layer_spec(shape):
    # Stacked-per-layer parameter slab [L, R, F]; stream one layer slice per
    # grid step (default double-buffering pipelines the weight DMA).
    nd = len(shape)
    return pl.BlockSpec((1,) + tuple(shape[1:]), lambda l: (l,) + (0,) * (nd - 1))


# --------------------------------------------------------------------------- #
# Per-layer parameter slab layout: [7F+32, F] f32
#   rows [0:3F)   : edge FNN layer-1 weight blocks [W1_src; W1_dst; W1_e]
#   rows [3F:4F)  : edge FNN layer-2 weight
#   rows [4F:6F)  : node FNN layer-1 weight blocks [Wn_v; Wn_agg]
#   rows [6F:7F)  : node FNN layer-2 weight
#   rows 7F, 7F+8, 7F+16, 7F+24 : biases b1e, b2e, b1n, b2n (8-aligned)
# --------------------------------------------------------------------------- #
def _interaction_step(f, v_scr, e_scr, gather_ref, scat_ref, inv_ref, slab_ref):
    """One InteractionNetwork layer; v_scr/e_scr are f32 VMEM scratch (in place)."""
    P = slab_ref[0]                                         # [7F+32, F] f32
    w1s, w1d, w1e = P[0:f], P[f:2 * f], P[2 * f:3 * f]
    w2e = P[3 * f:4 * f]
    wn_v, wn_agg = P[4 * f:5 * f], P[5 * f:6 * f]
    w2n = P[6 * f:7 * f]
    b0 = 7 * f
    b1e, b2e = P[b0:b0 + 1], P[b0 + 8:b0 + 9]
    b1n, b2n = P[b0 + 16:b0 + 17], P[b0 + 24:b0 + 25]

    v = v_scr[...]                                          # [N, F] f32
    e = e_scr[...]                                          # [E, F] f32

    # ---- edge FNN: selu([v_src, v_dst, e] @ W1 + b1e), factored through the
    #      structure matmul:  G @ [v@W1s ; v@W1d]  with G = [src_oh | dst_oh]
    rhs = jnp.concatenate(
        [jnp.dot(v, w1s, preferred_element_type=F32),
         jnp.dot(v, w1d, preferred_element_type=F32)], axis=0).astype(BF16)
    h_e = _selu(jnp.dot(gather_ref[...], rhs, preferred_element_type=F32)   # bf16 MXU
                + jnp.dot(e, w1e, preferred_element_type=F32) + b1e)
    e_new = jnp.dot(h_e, w2e, preferred_element_type=F32) + b2e + e          # residual

    # ---- mean aggregation + node FNN: selu(v@Wn_v + inv_deg*(scat@(e_new@Wn_agg)) + b1n)
    msg = jnp.dot(e_new, wn_agg, preferred_element_type=F32).astype(BF16)    # [E, F]
    agg = jnp.dot(scat_ref[...], msg, preferred_element_type=F32) * inv_ref[...]
    h_n = _selu(jnp.dot(v, wn_v, preferred_element_type=F32) + agg + b1n)
    v_scr[...] = jnp.dot(h_n, w2n, preferred_element_type=F32) + b2n + v     # residual
    e_scr[...] = e_new


# --------------------------------------------------------------------------- #
# Fused per-scale kernels (grid axis = layer index)
# --------------------------------------------------------------------------- #
def _bottleneck_kernel(f, fuse_out, *args):
    if fuse_out:
        (v_raw_ref, c_ref, e_lat_ref,
         w_in_ref, b_in_ref, w_c_ref, b_c_ref, w_e_ref, b_e_ref,
         gather_ref, scat_ref, inv_ref, w_out_ref, b_out_ref,
         slab_ref, v_out_ref, y_out_ref, v_scr, e_scr) = args
    else:
        (v_raw_ref, c_ref, e_lat_ref,
         w_in_ref, b_in_ref, w_c_ref, b_c_ref, w_e_ref, b_e_ref,
         gather_ref, scat_ref, inv_ref,
         slab_ref, v_out_ref, v_scr, e_scr) = args
        w_out_ref = b_out_ref = y_out_ref = None

    l = pl.program_id(0)

    @pl.when(l == 0)
    def _init():
        # v = in_node_layer(v) + in_cond_layers[0](c);  e = in_edge_layers[0](e)
        v_scr[...] = (
            jnp.dot(v_raw_ref[...], w_in_ref[...], preferred_element_type=F32)
            + b_in_ref[...]
            + jnp.dot(c_ref[...], w_c_ref[...], preferred_element_type=F32)
            + b_c_ref[...])
        e_scr[...] = (jnp.dot(e_lat_ref[...], w_e_ref[...],
                              preferred_element_type=F32) + b_e_ref[...])

    _interaction_step(f, v_scr, e_scr, gather_ref, scat_ref, inv_ref, slab_ref)

    @pl.when(l == pl.num_programs(0) - 1)
    def _finalize():
        v_out_ref[...] = v_scr[...]
        if fuse_out:   # static flag: fused final out_layer projection
            y_out_ref[...] = (jnp.dot(v_scr[...], w_out_ref[...],
                                      preferred_element_type=F32) + b_out_ref[...])


def _upblock_kernel(f, fuse_out, *args):
    if fuse_out:
        (v_coarse_ref, c_lat_ref, e_lat_ref, parent_oh_ref,
         w_c_ref, b_c_ref, w_e_ref, b_e_ref,
         w_u1_ref, b_u1_ref, w_u2_ref, b_u2_ref,
         gather_ref, scat_ref, inv_ref, w_out_ref, b_out_ref,
         slab_ref, v_out_ref, y_out_ref, v_scr, e_scr) = args
    else:
        (v_coarse_ref, c_lat_ref, e_lat_ref, parent_oh_ref,
         w_c_ref, b_c_ref, w_e_ref, b_e_ref,
         w_u1_ref, b_u1_ref, w_u2_ref, b_u2_ref,
         gather_ref, scat_ref, inv_ref,
         slab_ref, v_out_ref, v_scr, e_scr) = args
        w_out_ref = b_out_ref = y_out_ref = None

    l = pl.program_id(0)

    @pl.when(l == 0)
    def _init():
        # MeshUpMP (skip_connection=False): copy parent coarse features + 2-layer SELU FNN
        g = jnp.dot(parent_oh_ref[...], v_coarse_ref[...].astype(BF16),
                    preferred_element_type=F32)                       # [Nf, F]
        h = _selu(jnp.dot(g, w_u1_ref[...], preferred_element_type=F32)
                  + b_u1_ref[...])
        v_up = jnp.dot(h, w_u2_ref[...], preferred_element_type=F32) + b_u2_ref[...]
        # c = in_cond_layers[i+1](c_latent);  v += c
        c = (jnp.dot(c_lat_ref[...], w_c_ref[...], preferred_element_type=F32)
             + b_c_ref[...])
        v_scr[...] = v_up + c
        # e = in_edge_layers[i+1](e_latent)
        e_scr[...] = (jnp.dot(e_lat_ref[...], w_e_ref[...],
                              preferred_element_type=F32) + b_e_ref[...])

    _interaction_step(f, v_scr, e_scr, gather_ref, scat_ref, inv_ref, slab_ref)

    @pl.when(l == pl.num_programs(0) - 1)
    def _finalize():
        v_out_ref[...] = v_scr[...]
        if fuse_out:   # static flag: fused final out_layer projection
            y_out_ref[...] = (jnp.dot(v_scr[...], w_out_ref[...],
                                      preferred_element_type=F32) + b_out_ref[...])


# --------------------------------------------------------------------------- #
# Wrappers (glue)
# --------------------------------------------------------------------------- #
def _fused_call(kernel, const_inputs, slab, v_shape, e_shape, depth, out_dim=None):
    in_specs = ([_const_spec(x.shape) for x in const_inputs]
                + [_layer_spec(slab.shape)])
    v_spec = pl.BlockSpec(v_shape, lambda l: (0, 0))
    if out_dim is None:
        out_shape = jax.ShapeDtypeStruct(v_shape, F32)
        out_specs = v_spec
    else:
        out_shape = (jax.ShapeDtypeStruct(v_shape, F32),
                     jax.ShapeDtypeStruct((v_shape[0], out_dim), F32))
        out_specs = [v_spec,
                     pl.BlockSpec((v_shape[0], out_dim), lambda l: (0, 0))]
    return pl.pallas_call(
        kernel,
        out_shape=out_shape,
        grid_spec=pltpu.PrefetchScalarGridSpec(
            num_scalar_prefetch=0,
            grid=(depth,),
            in_specs=in_specs,
            out_specs=out_specs,
            scratch_shapes=[pltpu.VMEM(v_shape, F32),
                            pltpu.VMEM(e_shape, F32)]),
        compiler_params=pltpu.CompilerParams(
            dimension_semantics=("arbitrary",),      # layers are sequential
            vmem_limit_bytes=_VMEM_LIMIT),
    )(*const_inputs, slab)


def bottleneck_fused(v_raw, c_lat, e_lat, in_node, in_cond, in_edge,
                     consts, slab, depth, out_proj=None):
    w_in, b_in = in_node
    w_c, b_c = in_cond
    w_e, b_e = in_edge
    gather, scat, inv_cnt = consts
    n, f = c_lat.shape
    fuse = out_proj is not None
    const_inputs = [v_raw, c_lat, e_lat, w_in, b_in, w_c, b_c, w_e, b_e,
                    gather, scat, inv_cnt]
    if fuse:
        const_inputs += [out_proj[0], out_proj[1]]
    return _fused_call(partial(_bottleneck_kernel, f, fuse), const_inputs, slab,
                       (n, f), e_lat.shape, depth,
                       out_dim=out_proj[0].shape[1] if fuse else None)


def upblock_fused(v_coarse, c_lat, e_lat, parent_oh, in_cond, in_edge,
                  unpool, slab, consts, depth, out_proj=None):
    w_c, b_c = in_cond
    w_e, b_e = in_edge
    w_u1, b_u1, w_u2, b_u2 = unpool
    gather, scat, inv_cnt = consts
    nf, f = c_lat.shape
    fuse = out_proj is not None
    const_inputs = [v_coarse, c_lat, e_lat, parent_oh, w_c, b_c, w_e, b_e,
                    w_u1, b_u1, w_u2, b_u2, gather, scat, inv_cnt]
    if fuse:
        const_inputs += [out_proj[0], out_proj[1]]
    return _fused_call(partial(_upblock_kernel, f, fuse), const_inputs, slab,
                       (nf, f), e_lat.shape, depth,
                       out_dim=out_proj[0].shape[1] if fuse else None)


# --------------------------------------------------------------------------- #
# Per-scale graph constants (computed once per scale, reused by every layer)
# --------------------------------------------------------------------------- #
def graph_constants(edge_index, num_nodes):
    src = edge_index[0].astype(jnp.int32)
    dst = edge_index[1].astype(jnp.int32)
    ids = jnp.arange(num_nodes, dtype=jnp.int32)
    src_oh = (src[:, None] == ids[None, :]).astype(F32)
    dst_oh = (dst[:, None] == ids[None, :]).astype(F32)
    gather = jnp.concatenate([src_oh, dst_oh], axis=1).astype(BF16)  # [E, 2N]
    scat = dst_oh.T.astype(BF16)                                     # [N, E] scatter-sum
    counts = dst_oh.sum(axis=0)                                      # in-degree per node
    inv_cnt = (1.0 / jnp.maximum(counts, 1.0)).reshape(num_nodes, 1).astype(F32)
    return gather, scat, inv_cnt


def parent_one_hot(cluster, num_coarse):
    ids = jnp.arange(num_coarse, dtype=jnp.int32)
    return (cluster.astype(jnp.int32)[:, None] == ids[None, :]).astype(BF16)  # [Nf, Nc]


# --------------------------------------------------------------------------- #
# Parameter init (deterministic, torch.nn.Linear-style uniform)
# --------------------------------------------------------------------------- #
def _init_linear(key, fan_in, fan_out):
    kw, kb = jax.random.split(key)
    bound = 1.0 / (fan_in ** 0.5)
    w = jax.random.uniform(kw, (fan_in, fan_out), F32, -bound, bound)
    b = jax.random.uniform(kb, (1, fan_out), F32, -bound, bound)
    return w, b


def init_interaction_stack(key, f, depth):
    """Pack `depth` InteractionNetwork parameter sets into one [L, 7F+32, F] slab."""
    rows = 7 * f + 32
    slabs = []
    for k in jax.random.split(key, depth):
        k1, k2, k3, k4 = jax.random.split(k, 4)
        w1e, b1e = _init_linear(k1, 3 * f, f)   # edge FNN layer 1 (on concat) -> split
        w2e, b2e = _init_linear(k2, f, f)       # edge FNN layer 2
        w1n, b1n = _init_linear(k3, 2 * f, f)   # node FNN layer 1 (on concat) -> split
        w2n, b2n = _init_linear(k4, f, f)       # node FNN layer 2
        slab = jnp.zeros((rows, f), F32)
        slab = slab.at[0:3 * f].set(w1e)        # [W1_src; W1_dst; W1_e]
        slab = slab.at[3 * f:4 * f].set(w2e)
        slab = slab.at[4 * f:6 * f].set(w1n)    # [Wn_v; Wn_agg]
        slab = slab.at[6 * f:7 * f].set(w2n)
        b0 = 7 * f
        slab = slab.at[b0:b0 + 1].set(b1e)
        slab = slab.at[b0 + 8:b0 + 9].set(b2e)
        slab = slab.at[b0 + 16:b0 + 17].set(b1n)
        slab = slab.at[b0 + 24:b0 + 25].set(b2n)
        slabs.append(slab)
    return jnp.stack(slabs, axis=0)             # [depth, 7F+32, F]


class NodeDecoderPallas:
    def __init__(self, key, in_node_features, out_node_features, depths,
                 fnns_depth, fnns_width):
        assert fnns_depth == 2, "kernels hardcode 2-layer FNNs (fnns_depth=2)"
        self.num_scales = len(depths)
        self.depths = list(depths)
        f = fnns_width
        keys = iter(jax.random.split(key, 128))

        self.in_node = _init_linear(next(keys), in_node_features, f)
        self.in_cond = [_init_linear(next(keys), f, f) for _ in range(self.num_scales)]
        self.in_edge = [_init_linear(next(keys), f, f) for _ in range(self.num_scales)]
        self.bottleneck = init_interaction_stack(next(keys), f, self.depths[0])
        self.up_blocks = []
        for l in range(1, self.num_scales):
            k1, k2, k3 = jax.random.split(next(keys), 3)
            unpool = _init_linear(k1, f, f) + _init_linear(k2, f, f)  # (w1,b1,w2,b2)
            blocks = init_interaction_stack(k3, f, self.depths[l])
            self.up_blocks.append(dict(unpool=unpool, blocks=blocks))
        self.out_layer = _init_linear(next(keys), f, out_node_features)

    def forward(self, v, c_latent_list, e_latent_list, edge_index_list,
                batch_list, cluster_list):
        # lists follow torch semantics: popped from the end (coarsest scale last)
        c_latent_list = list(c_latent_list)
        e_latent_list = list(e_latent_list)
        edge_index_list = list(edge_index_list)
        batch_list = list(batch_list)
        cluster_list = list(cluster_list)

        edge_index = edge_index_list.pop()
        batch_list.pop()                       # unused by compute (single-graph batch)
        c_lat = c_latent_list.pop()
        e_lat = e_latent_list.pop()

        consts = graph_constants(edge_index, c_lat.shape[0])
        fuse = (self.num_scales == 1)
        res = bottleneck_fused(v, c_lat, e_lat, self.in_node, self.in_cond[0],
                               self.in_edge[0], consts, self.bottleneck,
                               self.depths[0],
                               out_proj=self.out_layer if fuse else None)
        if fuse:
            _, y = res
            return y
        v = res

        y = None
        for i, up in enumerate(self.up_blocks):
            c_lat = c_latent_list.pop()
            e_lat = e_latent_list.pop()
            edge_index = edge_index_list.pop()
            batch_list.pop()
            cluster = cluster_list.pop()
            consts = graph_constants(edge_index, c_lat.shape[0])
            p_oh = parent_one_hot(cluster, v.shape[0])
            fuse = (i == len(self.up_blocks) - 1)
            res = upblock_fused(v, c_lat, e_lat, p_oh, self.in_cond[i + 1],
                                self.in_edge[i + 1], up['unpool'], up['blocks'],
                                consts, self.depths[i + 1],
                                out_proj=self.out_layer if fuse else None)
            if fuse:
                v, y = res
            else:
                v = res
        return y


# --------------------------------------------------------------------------- #
if __name__ == "__main__":
    key = jax.random.PRNGKey(0)
    F = 32                      # fnns_width
    IN_F, OUT_F = 8, 3
    DEPTHS = [2, 2]             # 2 scales: bottleneck (coarse) + 1 up-block (fine)
    N1, E1 = 16, 48             # coarse graph
    N0, E0 = 32, 96             # fine graph

    ks = jax.random.split(key, 10)
    v = jax.random.normal(ks[0], (N1, IN_F), F32)
    c_coarse = jax.random.normal(ks[1], (N1, F), F32)
    c_fine = jax.random.normal(ks[2], (N0, F), F32)
    e_coarse = jax.random.normal(ks[3], (E1, F), F32)
    e_fine = jax.random.normal(ks[4], (E0, F), F32)
    ei_coarse = jax.random.randint(ks[5], (2, E1), 0, N1, jnp.int32)
    ei_fine = jax.random.randint(ks[6], (2, E0), 0, N0, jnp.int32)
    batch_coarse = jnp.zeros((N1,), jnp.int32)
    batch_fine = jnp.zeros((N0,), jnp.int32)
    # fine-node -> coarse-parent assignment used by the unpooling
    cluster_fine = jax.random.randint(ks[7], (N0,), 0, N1, jnp.int32)

    model = NodeDecoderPallas(ks[8], IN_F, OUT_F, DEPTHS, fnns_depth=2, fnns_width=F)

    out = model.forward(
        v,
        c_latent_list=[c_fine, c_coarse],   # coarsest scale at the end (popped first)
        e_latent_list=[e_fine, e_coarse],
        edge_index_list=[ei_fine, ei_coarse],
        batch_list=[batch_fine, batch_coarse],
        cluster_list=[cluster_fine],
    )
    jax.block_until_ready(out)
    assert out.shape == (N0, OUT_F) and out.dtype == F32
    assert bool(jnp.all(jnp.isfinite(out)))
    print("KERNEL_OK")
</pallas_src>

<mosaic_0001>
module attributes {stable_mosaic.version = 11 : i64} {
  func.func @k(%arg0: i32, %arg1: memref<8x128xf32, #tpu.memory_space<vmem>>, %arg2: memref<8x128xf32, #tpu.memory_space<vmem>>) attributes {dimension_semantics = [#tpu.dimension_semantics<arbitrary>], iteration_bounds = array<i64: 2>, scalar_prefetch = 0 : i64, scratch_operands = 0 : i64, tpu.core_type = #tpu.core_type<tc>, window_params = [{pipeline_mode = #tpu.pipeline_mode<synchronous>, transform_indices = @transform_0, window_bounds = array<i64: 8, 128>}, {pipeline_mode = #tpu.pipeline_mode<synchronous>, transform_indices = @transform_1, window_bounds = array<i64: 8, 128>}]} {
    %c0 = arith.constant 0 : index
    %c0_0 = arith.constant 0 : index
    %0 = vector.load %arg1[%c0, %c0_0] : memref<8x128xf32, #tpu.memory_space<vmem>>, vector<8x128xf32>
    %cst = arith.constant 1.000000e+00 : f32
    %1 = vector.broadcast %cst : f32 to vector<8x128xf32>
    %2 = arith.addf %0, %1 : vector<8x128xf32>
    %c0_1 = arith.constant 0 : index
    %c0_2 = arith.constant 0 : index
    %3 = vector.load %arg2[%c0_1, %c0_2] : memref<8x128xf32, #tpu.memory_space<vmem>>, vector<8x128xf32>
    tpu.vector_store %arg2[%c0_1, %c0_2], %2 {strides = array<i32>} : memref<8x128xf32, #tpu.memory_space<vmem>>, vector<8x128xf32>,
    return
  }
  func.func @transform_0(%arg0: i32) -> (i32, i32) {
    %c0_i32 = arith.constant 0 : i32
    %c0_i32_0 = arith.constant 0 : i32
    %c0_i32_1 = arith.constant 0 : i32
    return %c0_i32, %c0_i32_0 : i32, i32
  }
  func.func @transform_1(%arg0: i32) -> (i32, i32) {
    %c0_i32 = arith.constant 0 : i32
    %c0_i32_0 = arith.constant 0 : i32
    %c0_i32_1 = arith.constant 0 : i32
    return %c0_i32, %c0_i32_0 : i32, i32
  }
}

module attributes {stable_mosaic.version = 11 : i64} {
  func.func @_bottleneck_kernel(%arg0: i32, %arg1: memref<16x8xf32, #tpu.memory_space<vmem>>, %arg2: memref<16x32xf32, #tpu.memory_space<vmem>>, %arg3: memref<48x32xf32, #tpu.memory_space<vmem>>, %arg4: memref<8x32xf32, #tpu.memory_space<vmem>>, %arg5: memref<1x32xf32, #tpu.memory_space<vmem>>, %arg6: memref<32x32xf32, #tpu.memory_space<vmem>>, %arg7: memref<1x32xf32, #tpu.memory_space<vmem>>, %arg8: memref<32x32xf32, #tpu.memory_space<vmem>>, %arg9: memref<1x32xf32, #tpu.memory_space<vmem>>, %arg10: memref<48x32xbf16, #tpu.memory_space<vmem>>, %arg11: memref<16x48xbf16, #tpu.memory_space<vmem>>, %arg12: memref<16x1xf32, #tpu.memory_space<vmem>>, %arg13: memref<1x256x32xf32, #tpu.memory_space<vmem>>, %arg14: memref<16x32xf32, #tpu.memory_space<vmem>>, %arg15: memref<16x32xf32, #tpu.memory_space<vmem>>, %arg16: memref<48x32xf32, #tpu.memory_space<vmem>>) attributes {dimension_semantics = [#tpu.dimension_semantics<arbitrary>], iteration_bounds = array<i64: 2>, scalar_prefetch = 0 : i64, scratch_operands = 2 : i64, tpu.core_type = #tpu.core_type<tc>, window_params = [{pipeline_mode = #tpu.pipeline_mode<synchronous>, transform_indices = @transform_0, window_bounds = array<i64: 16, 8>}, {pipeline_mode = #tpu.pipeline_mode<synchronous>, transform_indices = @transform_1, window_bounds = array<i64: 16, 32>}, {pipeline_mode = #tpu.pipeline_mode<synchronous>, transform_indices = @transform_2, window_bounds = array<i64: 48, 32>}, {pipeline_mode = #tpu.pipeline_mode<synchronous>, transform_indices = @transform_3, window_bounds = array<i64: 8, 32>}, {pipeline_mode = #tpu.pipeline_mode<synchronous>, transform_indices = @transform_4, window_bounds = array<i64: 1, 32>}, {pipeline_mode = #tpu.pipeline_mode<synchronous>, transform_indices = @transform_5, window_bounds = array<i64: 32, 32>}, {pipeline_mode = #tpu.pipeline_mode<synchronous>, transform_indices = @transform_6, window_bounds = array<i64: 1, 32>}, {pipeline_mode = #tpu.pipeline_mode<synchronous>, transform_indices = @transform_7, window_bounds = array<i64: 32, 32>}, {pipeline_mode = #tpu.pipeline_mode<synchronous>, transform_indices = @transform_8, window_bounds = array<i64: 1, 32>}, {pipeline_mode = #tpu.pipeline_mode<synchronous>, transform_indices = @transform_9, window_bounds = array<i64: 48, 32>}, {pipeline_mode = #tpu.pipeline_mode<synchronous>, transform_indices = @transform_10, window_bounds = array<i64: 16, 48>}, {pipeline_mode = #tpu.pipeline_mode<synchronous>, transform_indices = @transform_11, window_bounds = array<i64: 16, 1>}, {transform_indices = @transform_12, window_bounds = array<i64: 1, 256, 32>}, {pipeline_mode = #tpu.pipeline_mode<synchronous>, transform_indices = @transform_13, window_bounds = array<i64: 16, 32>}]} {
    %c0_i32 = arith.constant 0 : i32
    %0 = arith.cmpi eq, %arg0, %c0_i32 : i32
    %1 = arith.extui %0 : i1 to i32
    %c0_i32_0 = arith.constant 0 : i32
    %2 = arith.cmpi ne, %1, %c0_i32_0 : i32
    scf.if %2 {
      %c0_34 = arith.constant 0 : index
      %c0_35 = arith.constant 0 : index
      %72 = vector.load %arg1[%c0_34, %c0_35] : memref<16x8xf32, #tpu.memory_space<vmem>>, vector<16x8xf32>
      %c0_36 = arith.constant 0 : index
      %c0_37 = arith.constant 0 : index
      %73 = vector.load %arg4[%c0_36, %c0_37] : memref<8x32xf32, #tpu.memory_space<vmem>>, vector<8x32xf32>
      %cst_38 = arith.constant dense<0.000000e+00> : vector<16x32xf32>
      %74 = tpu.matmul %72, %73, %cst_38 {dimension_numbers = #tpu.dot_dimension_numbers<[1], [0], [0], [1], [0, 0, 1, 1], [], []>} : vector<16x8xf32>, vector<8x32xf32>, vector<16x32xf32> -> vector<16x32xf32>
      %c0_39 = arith.constant 0 : index
      %c0_40 = arith.constant 0 : index
      %75 = vector.load %arg5[%c0_39, %c0_40] : memref<1x32xf32, #tpu.memory_space<vmem>>, vector<1x32xf32>
      %76 = vector.broadcast %75 : vector<1x32xf32> to vector<16x32xf32>
      %77 = arith.addf %74, %76 : vector<16x32xf32>
      %c0_41 = arith.constant 0 : index
      %c0_42 = arith.constant 0 : index
      %78 = vector.load %arg2[%c0_41, %c0_42] : memref<16x32xf32, #tpu.memory_space<vmem>>, vector<16x32xf32>
      %c0_43 = arith.constant 0 : index
      %c0_44 = arith.constant 0 : index
      %79 = vector.load %arg6[%c0_43, %c0_44] : memref<32x32xf32, #tpu.memory_space<vmem>>, vector<32x32xf32>
      %cst_45 = arith.constant dense<0.000000e+00> : vector<16x32xf32>
      %80 = tpu.matmul %78, %79, %cst_45 {dimension_numbers = #tpu.dot_dimension_numbers<[1], [0], [0], [1], [0, 0, 1, 1], [], []>} : vector<16x32xf32>, vector<32x32xf32>, vector<16x32xf32> -> vector<16x32xf32>
      %81 = arith.addf %77, %80 : vector<16x32xf32>
      %c0_46 = arith.constant 0 : index
      %c0_47 = arith.constant 0 : index
      %82 = vector.load %arg7[%c0_46, %c0_47] : memref<1x32xf32, #tpu.memory_space<vmem>>, vector<1x32xf32>
      %83 = vector.broadcast %82 : vector<1x32xf32> to vector<16x32xf32>
      %84 = arith.addf %81, %83 : vector<16x32xf32>
      %c0_48 = arith.constant 0 : index
      %c0_49 = arith.constant 0 : index
      %85 = vector.load %arg15[%c0_48, %c0_49] : memref<16x32xf32, #tpu.memory_space<vmem>>, vector<16x32xf32>
      tpu.vector_store %arg15[%c0_48, %c0_49], %84 {strides = array<i32>} : memref<16x32xf32, #tpu.memory_space<vmem>>, vector<16x32xf32>,
      %c0_50 = arith.constant 0 : index
      %c0_51 = arith.constant 0 : index
      %86 = vector.load %arg3[%c0_50, %c0_51] : memref<48x32xf32, #tpu.memory_space<vmem>>, vector<48x32xf32>
      %c0_52 = arith.constant 0 : index
      %c0_53 = arith.constant 0 : index
      %87 = vector.load %arg8[%c0_52, %c0_53] : memref<32x32xf32, #tpu.memory_space<vmem>>, vector<32x32xf32>
      %cst_54 = arith.constant dense<0.000000e+00> : vector<48x32xf32>
      %88 = tpu.matmul %86, %87, %cst_54 {dimension_numbers = #tpu.dot_dimension_numbers<[1], [0], [0], [1], [0, 0, 1, 1], [], []>} : vector<48x32xf32>, vector<32x32xf32>, vector<48x32xf32> -> vector<48x32xf32>
      %c0_55 = arith.constant 0 : index
      %c0_56 = arith.constant 0 : index
      %89 = vector.load %arg9[%c0_55, %c0_56] : memref<1x32xf32, #tpu.memory_space<vmem>>, vector<1x32xf32>
      %90 = vector.broadcast %89 : vector<1x32xf32> to vector<48x32xf32>
      %91 = arith.addf %88, %90 : vector<48x32xf32>
      %c0_57 = arith.constant 0 : index
      %c0_58 = arith.constant 0 : index
      %92 = vector.load %arg16[%c0_57, %c0_58] : memref<48x32xf32, #tpu.memory_space<vmem>>, vector<48x32xf32>
      tpu.vector_store %arg16[%c0_57, %c0_58], %91 {strides = array<i32>} : memref<48x32xf32, #tpu.memory_space<vmem>>, vector<48x32xf32>,
    } else {
    }
    %c0 = arith.constant 0 : index
    %c0_1 = arith.constant 0 : index
    %c0_2 = arith.constant 0 : index
    %3 = vector.load %arg13[%c0, %c0_1, %c0_2] : memref<1x256x32xf32, #tpu.memory_space<vmem>>, vector<1x256x32xf32>
    %4 = vector.shape_cast %3 : vector<1x256x32xf32> to vector<256x32xf32>
    %5 = vector.extract_strided_slice %4 {offsets = [0, 0], sizes = [32, 32], strides = [1, 1]} : vector<256x32xf32> to vector<32x32xf32>
    %6 = vector.extract_strided_slice %4 {offsets = [32, 0], sizes = [32, 32], strides = [1, 1]} : vector<256x32xf32> to vector<32x32xf32>
    %7 = vector.extract_strided_slice %4 {offsets = [64, 0], sizes = [32, 32], strides = [1, 1]} : vector<256x32xf32> to vector<32x32xf32>
    %8 = vector.extract_strided_slice %4 {offsets = [96, 0], sizes = [32, 32], strides = [1, 1]} : vector<256x32xf32> to vector<32x32xf32>
    %9 = vector.extract_strided_slice %4 {offsets = [128, 0], sizes = [32, 32], strides = [1, 1]} : vector<256x32xf32> to vector<32x32xf32>
    %10 = vector.extract_strided_slice %4 {offsets = [160, 0], sizes = [32, 32], strides = [1, 1]} : vector<256x32xf32> to vector<32x32xf32>
    %11 = vector.extract_strided_slice %4 {offsets = [192, 0], sizes = [32, 32], strides = [1, 1]} : vector<256x32xf32> to vector<32x32xf32>
    %12 = vector.extract_strided_slice %4 {offsets = [224, 0], sizes = [1, 32], strides = [1, 1]} : vector<256x32xf32> to vector<1x32xf32>
    %13 = vector.extract_strided_slice %4 {offsets = [232, 0], sizes = [1, 32], strides = [1, 1]} : vector<256x32xf32> to vector<1x32xf32>
    %14 = vector.extract_strided_slice %4 {offsets = [240, 0], sizes = [1, 32], strides = [1, 1]} : vector<256x32xf32> to vector<1x32xf32>
    %15 = vector.extract_strided_slice %4 {offsets = [248, 0], sizes = [1, 32], strides = [1, 1]} : vector<256x32xf32> to vector<1x32xf32>
    %c0_3 = arith.constant 0 : index
    %c0_4 = arith.constant 0 : index
    %16 = vector.load %arg15[%c0_3, %c0_4] : memref<16x32xf32, #tpu.memory_space<vmem>>, vector<16x32xf32>
    %c0_5 = arith.constant 0 : index
    %c0_6 = arith.constant 0 : index
    %17 = vector.load %arg16[%c0_5, %c0_6] : memref<48x32xf32, #tpu.memory_space<vmem>>, vector<48x32xf32>
    %cst = arith.constant dense<0.000000e+00> : vector<16x32xf32>
    %18 = tpu.matmul %16, %5, %cst {dimension_numbers = #tpu.dot_dimension_numbers<[1], [0], [0], [1], [0, 0, 1, 1], [], []>} : vector<16x32xf32>, vector<32x32xf32>, vector<16x32xf32> -> vector<16x32xf32>
    %cst_7 = arith.constant dense<0.000000e+00> : vector<16x32xf32>
    %19 = tpu.matmul %16, %6, %cst_7 {dimension_numbers = #tpu.dot_dimension_numbers<[1], [0], [0], [1], [0, 0, 1, 1], [], []>} : vector<16x32xf32>, vector<32x32xf32>, vector<16x32xf32> -> vector<16x32xf32>
    %20 = tpu.concatenate %18, %19 in 0 : vector<16x32xf32>, vector<16x32xf32> -> vector<32x32xf32>
    %21 = arith.truncf %20 : vector<32x32xf32> to vector<32x32xbf16>
    %c0_8 = arith.constant 0 : index
    %c0_9 = arith.constant 0 : index
    %22 = vector.load %arg10[%c0_8, %c0_9] : memref<48x32xbf16, #tpu.memory_space<vmem>>, vector<48x32xbf16>
    %cst_10 = arith.constant dense<0.000000e+00> : vector<48x32xf32>
    %23 = tpu.matmul %22, %21, %cst_10 {dimension_numbers = #tpu.dot_dimension_numbers<[1], [0], [0], [1], [0, 0, 1, 1], [], []>} : vector<48x32xbf16>, vector<32x32xbf16>, vector<48x32xf32> -> vector<48x32xf32>
    %cst_11 = arith.constant dense<0.000000e+00> : vector<48x32xf32>
    %24 = tpu.matmul %17, %7, %cst_11 {dimension_numbers = #tpu.dot_dimension_numbers<[1], [0], [0], [1], [0, 0, 1, 1], [], []>} : vector<48x32xf32>, vector<32x32xf32>, vector<48x32xf32> -> vector<48x32xf32>
    %25 = arith.addf %23, %24 : vector<48x32xf32>
    %26 = vector.broadcast %12 : vector<1x32xf32> to vector<48x32xf32>
    %27 = arith.addf %25, %26 : vector<48x32xf32>
    %cst_12 = arith.constant 0.000000e+00 : f32
    %28 = vector.broadcast %cst_12 : f32 to vector<48x32xf32>
    %29 = arith.cmpf ogt, %27, %28 : vector<48x32xf32>
    %30 = math.exp %27 : vector<48x32xf32>
    %cst_13 = arith.constant 1.000000e+00 : f32
    %31 = vector.broadcast %cst_13 : f32 to vector<48x32xf32>
    %32 = arith.subf %30, %31 : vector<48x32xf32>
    %cst_14 = arith.constant 1.67326319 : f32
    %33 = vector.broadcast %cst_14 : f32 to vector<48x32xf32>
    %34 = arith.mulf %33, %32 : vector<48x32xf32>
    %35 = arith.select %29, %27, %34 : vector<48x32xi1>, vector<48x32xf32>
    %cst_15 = arith.constant 1.05070102 : f32
    %36 = vector.broadcast %cst_15 : f32 to vector<48x32xf32>
    %37 = arith.mulf %36, %35 : vector<48x32xf32>
    %cst_16 = arith.constant dense<0.000000e+00> : vector<48x32xf32>
    %38 = tpu.matmul %37, %8, %cst_16 {dimension_numbers = #tpu.dot_dimension_numbers<[1], [0], [0], [1], [0, 0, 1, 1], [], []>} : vector<48x32xf32>, vector<32x32xf32>, vector<48x32xf32> -> vector<48x32xf32>
    %39 = vector.broadcast %13 : vector<1x32xf32> to vector<48x32xf32>
    %40 = arith.addf %38, %39 : vector<48x32xf32>
    %41 = arith.addf %40, %17 : vector<48x32xf32>
    %cst_17 = arith.constant dense<0.000000e+00> : vector<48x32xf32>
    %42 = tpu.matmul %41, %10, %cst_17 {dimension_numbers = #tpu.dot_dimension_numbers<[1], [0], [0], [1], [0, 0, 1, 1], [], []>} : vector<48x32xf32>, vector<32x32xf32>, vector<48x32xf32> -> vector<48x32xf32>
    %43 = arith.truncf %42 : vector<48x32xf32> to vector<48x32xbf16>
    %c0_18 = arith.constant 0 : index
    %c0_19 = arith.constant 0 : index
    %44 = vector.load %arg11[%c0_18, %c0_19] : memref<16x48xbf16, #tpu.memory_space<vmem>>, vector<16x48xbf16>
    %cst_20 = arith.constant dense<0.000000e+00> : vector<16x32xf32>
    %45 = tpu.matmul %44, %43, %cst_20 {dimension_numbers = #tpu.dot_dimension_numbers<[1], [0], [0], [1], [0, 0, 1, 1], [], []>} : vector<16x48xbf16>, vector<48x32xbf16>, vector<16x32xf32> -> vector<16x32xf32>
    %c0_21 = arith.constant 0 : index
    %c0_22 = arith.constant 0 : index
    %46 = vector.load %arg12[%c0_21, %c0_22] : memref<16x1xf32, #tpu.memory_space<vmem>>, vector<16x1xf32>
    %47 = vector.broadcast %46 : vector<16x1xf32> to vector<16x32xf32>
    %48 = arith.mulf %45, %47 : vector<16x32xf32>
    %cst_23 = arith.constant dense<0.000000e+00> : vector<16x32xf32>
    %49 = tpu.matmul %16, %9, %cst_23 {dimension_numbers = #tpu.dot_dimension_numbers<[1], [0], [0], [1], [0, 0, 1, 1], [], []>} : vector<16x32xf32>, vector<32x32xf32>, vector<16x32xf32> -> vector<16x32xf32>
    %50 = arith.addf %49, %48 : vector<16x32xf32>
    %51 = vector.broadcast %14 : vector<1x32xf32> to vector<16x32xf32>
    %52 = arith.addf %50, %51 : vector<16x32xf32>
    %cst_24 = arith.constant 0.000000e+00 : f32
    %53 = vector.broadcast %cst_24 : f32 to vector<16x32xf32>
    %54 = arith.cmpf ogt, %52, %53 : vector<16x32xf32>
    %55 = math.exp %52 : vector<16x32xf32>
    %cst_25 = arith.constant 1.000000e+00 : f32
    %56 = vector.broadcast %cst_25 : f32 to vector<16x32xf32>
    %57 = arith.subf %55, %56 : vector<16x32xf32>
    %cst_26 = arith.constant 1.67326319 : f32
    %58 = vector.broadcast %cst_26 : f32 to vector<16x32xf32>
    %59 = arith.mulf %58, %57 : vector<16x32xf32>
    %60 = arith.select %54, %52, %59 : vector<16x32xi1>, vector<16x32xf32>
    %cst_27 = arith.constant 1.05070102 : f32
    %61 = vector.broadcast %cst_27 : f32 to vector<16x32xf32>
    %62 = arith.mulf %61, %60 : vector<16x32xf32>
    %cst_28 = arith.constant dense<0.000000e+00> : vector<16x32xf32>
    %63 = tpu.matmul %62, %11, %cst_28 {dimension_numbers = #tpu.dot_dimension_numbers<[1], [0], [0], [1], [0, 0, 1, 1], [], []>} : vector<16x32xf32>, vector<32x32xf32>, vector<16x32xf32> -> vector<16x32xf32>
    %64 = vector.broadcast %15 : vector<1x32xf32> to vector<16x32xf32>
    %65 = arith.addf %63, %64 : vector<16x32xf32>
    %66 = arith.addf %65, %16 : vector<16x32xf32>
    %c0_29 = arith.constant 0 : index
    %c0_30 = arith.constant 0 : index
    %67 = vector.load %arg15[%c0_29, %c0_30] : memref<16x32xf32, #tpu.memory_space<vmem>>, vector<16x32xf32>
    tpu.vector_store %arg15[%c0_29, %c0_30], %66 {strides = array<i32>} : memref<16x32xf32, #tpu.memory_space<vmem>>, vector<16x32xf32>,
    %c0_31 = arith.constant 0 : index
    %c0_32 = arith.constant 0 : index
    %68 = vector.load %arg16[%c0_31, %c0_32] : memref<48x32xf32, #tpu.memory_space<vmem>>, vector<48x32xf32>
    tpu.vector_store %arg16[%c0_31, %c0_32], %41 {strides = array<i32>} : memref<48x32xf32, #tpu.memory_space<vmem>>, vector<48x32xf32>,
    %c1_i32 = arith.constant 1 : i32
    %69 = arith.cmpi eq, %arg0, %c1_i32 : i32
    %70 = arith.extui %69 : i1 to i32
    %c0_i32_33 = arith.constant 0 : i32
    %71 = arith.cmpi ne, %70, %c0_i32_33 : i32
    scf.if %71 {
      %c0_34 = arith.constant 0 : index
      %c0_35 = arith.constant 0 : index
      %72 = vector.load %arg15[%c0_34, %c0_35] : memref<16x32xf32, #tpu.memory_space<vmem>>, vector<16x32xf32>
      %c0_36 = arith.constant 0 : index
      %c0_37 = arith.constant 0 : index
      %73 = vector.load %arg14[%c0_36, %c0_37] : memref<16x32xf32, #tpu.memory_space<vmem>>, vector<16x32xf32>
      tpu.vector_store %arg14[%c0_36, %c0_37], %72 {strides = array<i32>} : memref<16x32xf32, #tpu.memory_space<vmem>>, vector<16x32xf32>,
    } else {
    }
    return
  }
  func.func @transform_0(%arg0: i32) -> (i32, i32) {
    %c0_i32 = arith.constant 0 : i32
    %c0_i32_0 = arith.constant 0 : i32
    %c0_i32_1 = arith.constant 0 : i32
    return %c0_i32, %c0_i32_0 : i32, i32
  }
  func.func @transform_1(%arg0: i32) -> (i32, i32) {
    %c0_i32 = arith.constant 0 : i32
    %c0_i32_0 = arith.constant 0 : i32
    %c0_i32_1 = arith.constant 0 : i32
    return %c0_i32, %c0_i32_0 : i32, i32
  }
  func.func @transform_2(%arg0: i32) -> (i32, i32) {
    %c0_i32 = arith.constant 0 : i32
    %c0_i32_0 = arith.constant 0 : i32
    %c0_i32_1 = arith.constant 0 : i32
    return %c0_i32, %c0_i32_0 : i32, i32
  }
  func.func @transform_3(%arg0: i32) -> (i32, i32) {
    %c0_i32 = arith.constant 0 : i32
    %c0_i32_0 = arith.constant 0 : i32
    %c0_i32_1 = arith.constant 0 : i32
    return %c0_i32, %c0_i32_0 : i32, i32
  }
  func.func @transform_4(%arg0: i32) -> (i32, i32) {
    %c0_i32 = arith.constant 0 : i32
    %c0_i32_0 = arith.constant 0 : i32
    %c0_i32_1 = arith.constant 0 : i32
    return %c0_i32, %c0_i32_0 : i32, i32
  }
  func.func @transform_5(%arg0: i32) -> (i32, i32) {
    %c0_i32 = arith.constant 0 : i32
    %c0_i32_0 = arith.constant 0 : i32
    %c0_i32_1 = arith.constant 0 : i32
    return %c0_i32, %c0_i32_0 : i32, i32
  }
  func.func @transform_6(%arg0: i32) -> (i32, i32) {
    %c0_i32 = arith.constant 0 : i32
    %c0_i32_0 = arith.constant 0 : i32
    %c0_i32_1 = arith.constant 0 : i32
    return %c0_i32, %c0_i32_0 : i32, i32
  }
  func.func @transform_7(%arg0: i32) -> (i32, i32) {
    %c0_i32 = arith.constant 0 : i32
    %c0_i32_0 = arith.constant 0 : i32
    %c0_i32_1 = arith.constant 0 : i32
    return %c0_i32, %c0_i32_0 : i32, i32
  }
  func.func @transform_8(%arg0: i32) -> (i32, i32) {
    %c0_i32 = arith.constant 0 : i32
    %c0_i32_0 = arith.constant 0 : i32
    %c0_i32_1 = arith.constant 0 : i32
    return %c0_i32, %c0_i32_0 : i32, i32
  }
  func.func @transform_9(%arg0: i32) -> (i32, i32) {
    %c0_i32 = arith.constant 0 : i32
    %c0_i32_0 = arith.constant 0 : i32
    %c0_i32_1 = arith.constant 0 : i32
    return %c0_i32, %c0_i32_0 : i32, i32
  }
  func.func @transform_10(%arg0: i32) -> (i32, i32) {
    %c0_i32 = arith.constant 0 : i32
    %c0_i32_0 = arith.constant 0 : i32
    %c0_i32_1 = arith.constant 0 : i32
    return %c0_i32, %c0_i32_0 : i32, i32
  }
  func.func @transform_11(%arg0: i32) -> (i32, i32) {
    %c0_i32 = arith.constant 0 : i32
    %c0_i32_0 = arith.constant 0 : i32
    %c0_i32_1 = arith.constant 0 : i32
    return %c0_i32, %c0_i32_0 : i32, i32
  }
  func.func @transform_12(%arg0: i32) -> (i32, i32, i32) {
    %c0_i32 = arith.constant 0 : i32
    %c0_i32_0 = arith.constant 0 : i32
    %c0_i32_1 = arith.constant 0 : i32
    return %arg0, %c0_i32, %c0_i32_0 : i32, i32, i32
  }
  func.func @transform_13(%arg0: i32) -> (i32, i32) {
    %c0_i32 = arith.constant 0 : i32
    %c0_i32_0 = arith.constant 0 : i32
    %c0_i32_1 = arith.constant 0 : i32
    return %c0_i32, %c0_i32_0 : i32, i32
  }
}

</mosaic_0001>

<bundles_post_ra>
// kernel: tpu_custom_call.1
= control target key start
LH: loop header
LB: loop body
LE: loop exit
PB: predicated region body
PF: predicated region fallthrough
CT: control target
= control target key end

     0   :  { %6 = vsyncpa [#allocation3], 0  ;;  %s287_s0 = inlined_call_operand.hbm [shape: f32[8,128], index: 0, kind: input, shape index: {}]   ;;  %s288_s1 = inlined_call_operand.hbm [shape: f32[8,128], index: 1, kind: output, shape index: {}]  }
   0x1   :  { %7 = vsyncpa [#allocation4], 0  ;;  %s270_s6 = smov 0  }
   0x2 LB: > { %s149_s7 = sadd.s32 4294967295, %s256_s6   ;;  %p150_p0 = scmp.ge.s32.totalorder %s256_s6, 1  ;;  %s256_s6 = sphi %s270_s6, %s13_s6  }
   0x3   : > { %p60_p1 = scmp.lt.s32.totalorder %s256_s6, 3  ;;  %s72_s10 = sshll.u32 %s287_s0, 4  ;;  %s73_s10 = int_to_ptr.hbm [resolvable:$true] %s72_s10 }
   0x4   : > { %p170_p3 = scmp.eq.s32.totalorder %s149_s7, 0  ;;  %s258_s11 = smov [#allocation2]  }
   0x5   : > { %p61_p2 = pnand %p150_p0, %p60_p1  ;;  %s74_s12 = sshll.u32 %s258_s11, 4  ;;  %s75_s12 = int_to_ptr.vmem [resolvable:$true] %s74_s12 }
   0x7   : > { %p166_p4 = pneg %p61_p2  ;;  %87 = sbr.rel (%p61_p2) target bundleno = 20 (0x14), region = 24 }
   0x9   : > { %p167_p5 = pnand %p170_p3, %p166_p4 }
   0xb   : > { %169 = dma.hbm_to_vmem [thread:$0]  (!%p167_p5), %s73_s10, 128, %s75_s12, [#allocation3]  }
   0xc   : > { %247 = dma.done.wait (%p170_p3), [#allocation3], 128  }
   0xd   : > { %249 = vsyncadd (%p170_p3), [#allocation3], 4294967168  ;;  %s259_s13 = smov [#allocation5]   ;;  %s109_s17 = sshll.u32 %s288_s1, 4  ;;  %v98_v0 = vld [vmem:[#allocation2] sm:$0xff]  ;;  %s110_s17 = int_to_ptr.hbm [resolvable:$true] %s109_s17 }
   0xe   : > { %s107_s14 = sshll.u32 %s259_s13, 4  ;;  %p172_p6 = scmp.eq.s32.totalorder %s149_s7, 1  ;;  %v99_v1 = vadd.f32 1.0, %v98_v0  ;;  %s108_s14 = int_to_ptr.vmem [resolvable:$true] %s107_s14 }
  0x10   : > { %100 = vst [vmem:[#allocation5] sm:$0xff] %v99_v1 }
  0x11   : > { %163 = dma.vmem_to_hbm [thread:$0]  (%p172_p6), %s108_s14, 128, %s110_s17, [#allocation4]  }
  0x12   : > { %251 = dma.done.wait (%p172_p6), [#allocation4], 128  }
  0x13   : > { %253 = vsyncadd (%p172_p6), [#allocation4], 4294967168 }
  0x14 PF: > { %s13_s6 = sadd.s32 1, %s256_s6  }
  0x15   : > { %p10_p7 = scmp.ge.s32.totalorder %s13_s6, 4  }
  0x17   :  { %12 = sbr.rel (!%p10_p7) target bundleno = 2 (0x2), region = 53 }
  0x1c   :  { %123 = vsyncpa [#allocation3], 1 }
  0x1d   :  { %125 = vsyncpa [#allocation3 + $0x1], 1 }
  0x1e   :  { %126 = vsyncpa [#allocation4], 1 }
  0x1f   :  { %128 = vsyncpa [#allocation4 + $0x1], 1 }

// kernel: tpu_custom_call.1
= control target key start
LH: loop header
LB: loop body
LE: loop exit
PB: predicated region body
PF: predicated region fallthrough
CT: control target
= control target key end

     0   :  { %18 = vsyncpa [#allocation5], 0  ;;  %s1373_s25 = smov 0   ;;  %s1608_s0 = inlined_call_operand.vmem [shape: f32[16,8], index: 0, kind: input, shape index: {}]   ;;  %s1609_s1 = inlined_call_operand.vmem [shape: f32[16,32], index: 1, kind: input, shape index: {}]   ;;  %s1610_s2 = inlined_call_operand.vmem [shape: f32[48,32], index: 2, kind: input, shape index: {}]   ;;  %s1611_s3 = inlined_call_operand.vmem [shape: f32[8,32], index: 3, kind: input, shape index: {}]   ;;  %s1612_s4 = inlined_call_operand.vmem [shape: f32[1,32], index: 4, kind: input, shape index: {}]   ;;  %s1613_s5 = inlined_call_operand.vmem [shape: f32[32,32], index: 5, kind: input, shape index: {}]   ;;  %s1614_s6 = inlined_call_operand.vmem [shape: f32[1,32], index: 6, kind: input, shape index: {}]   ;;  %s1615_s7 = inlined_call_operand.vmem [shape: f32[32,32], index: 7, kind: input, shape index: {}]   ;;  %s1616_s8 = inlined_call_operand.vmem [shape: f32[1,32], index: 8, kind: input, shape index: {}]   ;;  %s1617_s9 = inlined_call_operand.vmem [shape: bf16[48,32], index: 9, kind: input, shape index: {}]   ;;  %s1618_s10 = inlined_call_operand.vmem [shape: bf16[16,48], index: 10, kind: input, shape index: {}]   ;;  %s1619_s11 = inlined_call_operand.vmem [shape: f32[16,1], index: 11, kind: input, shape index: {}]   ;;  %s1620_s12 = inlined_call_operand.vmem [shape: f32[2,256,32], index: 12, kind: input, shape index: {}]   ;;  %s1621_s13 = inlined_call_operand.hbm [shape: f32[16,32], index: 13, kind: output, shape index: {}]  }
   0x1 LB: > { %s1379_s26 = sadd.s32 4294967295, %s1297_s25   ;;  %p1135_p0 = scmp.ge.s32.totalorder %s1297_s25, 1  ;;  %s1297_s25 = sphi %s1373_s25, %s24_s25  }
   0x2   : > { %p383_p1 = scmp.lt.s32.totalorder %s1297_s25, 3 }
   0x4   : > { %p384_p2 = pnand %p1135_p0, %p383_p1 }
   0x5   : > { %p422_p3 = scmp.lt.s32.totalorder (!%p384_p2), %s1379_s26, 1  ;;  %p1138_p4 = scmp.ne.s32.totalorder (!%p384_p2), %s1379_s26, 0 }
   0x6   : > { %387 = sbr.rel (%p384_p2) target bundleno = 1104 (0x450), region = 72 }
   0xb   : > { %s423_s27 = scalar_select %p422_p3, %s1379_s26, 1 }
   0xc   : > { %431 = sbr.rel (%p1138_p4) target bundleno = 177 (0xb1), region = 76 }
   0xd   : > { %s1208_s28 = sshll.u32 %s423_s27, 8 }
   0xe   : > { %s1388_s14 = scalar_lea.vmem %s1620_s12, %s1208_s28 }
  0x11   : > { %v524_v0 = vld [vmem:[%s1615_s7 + $0x18] sm:$0xff]  ;;  %v523_v1 = vld [vmem:[%s1615_s7 + $0x10] sm:$0xff]  ;;  %v522_v2 = vld [vmem:[%s1615_s7 + $0x8] sm:$0xff]  ;;  %vm439_vm0 = vcmask 64512   ;;  %vm475_vm1 = vcmask 261120  }
  0x12   : > { %559 = vmatpush.msra.mxu2 %v524_v0  ;;  %1213 = vmatpush.msra.mxu3 %v524_v0  ;;  %v474_v3 = vld [vmem:[%s1613_s5 + $0x18] sm:$0xff]  ;;  %v473_v4 = vld [vmem:[%s1613_s5 + $0x10] sm:$0xff]  ;;  %v434_v5 = vld [vmem:[%s1611_s3] sm:$0xff] }
  0x13   : > { %v521_v6 = vld [vmem:[%s1615_s7] sm:$0xff]  ;;  %494 = vmatpush.msra.mxu1 %v474_v3  ;;  %461 = vmatpush.msra.mxu0 %v434_v5  ;;  %v518_v9 = vld [vmem:[%s1610_s2 + $0x18] sm:$0xff]  ;;  %v472_v10 = vld [vmem:[%s1613_s5 + $0x8] sm:$0xff] }
  0x14   : > { %560 = vmatpush.msra.mxu2 %v523_v1  ;;  %1214 = vmatpush.msra.mxu3 %v523_v1  ;;  %v432_v7 = vld [vmem:[%s1608_s0] sm:$0xff]  ;;  %v433_v13 = vld [vmem:[%s1608_s0 + $0x8] sm:$0xff]  ;;  %v517_v17 = vld [vmem:[%s1610_s2 + $0x10] sm:$0xff] }
  0x15   : > { %v515_v8 = vld [vmem:[%s1610_s2] sm:$0xff]  ;;  %495 = vmatpush.msra.mxu1 %v473_v4  ;;  %1139 = vmatmul.msk.f32.vlgmr.msra.gmra.mxu0 %vm439_vm0, %v432_v7  ;;  %v516_v14 = vld [vmem:[%s1610_s2 + $0x8] sm:$0xff] }
  0x16   : > { %561 = vmatpush.msra.mxu2 %v522_v2  ;;  %1215 = vmatpush.msra.mxu3 %v522_v2  ;;  %v471_v11 = vld [vmem:[%s1613_s5] sm:$0xff]  ;;  %v470_v16 = vld [vmem:[%s1609_s1 + $0x8] sm:$0xff] }
  0x17   : > { %496 = vmatpush.msra.mxu1 %v472_v10  ;;  %v469_v12 = vld [vmem:[%s1609_s1] sm:$0xff]  ;;  %v520_v18 = vld [vmem:[%s1610_s2 + $0x28] sm:$0xff] }
  0x18   : > { %562 = vmatpush.msra.mxu2 %v521_v6  ;;  %1216 = vmatpush.msra.mxu3 %v521_v6  ;;  %v519_v15 = vld [vmem:[%s1610_s2 + $0x20] sm:$0xff] }
  0x19   : > { %1143 = vmatmul.msk.f32.vlgmr.msra.gmra.mxu2 %vm475_vm1, %v515_v8  ;;  %1146 = vmatmul.msk.f32.vlgmr.msra.gmra.mxu3 %vm475_vm1, %v518_v9  ;;  %v1240_v19 = vld [vmem:[%s1612_s4] ss:$0 sm:$0xff] }
  0x1a   : > { %497 = vmatpush.msra.mxu1 %v471_v11  ;;  %v1239_v22 = vld [vmem:[%s1616_s8] ss:$0 sm:$0xff] }
  0x1b   : > { %1141 = vmatmul.msk.f32.vlgmr.msra.gmra.mxu1 %vm475_vm1, %v469_v12  ;;  %v1241_v23 = vld [vmem:[%s1614_s6] ss:$0 sm:$0xff] }
  0x1d   : > { %1140 = vmatmul.msk.f32.gmra.mxu0 %vm439_vm0, %v433_v13 }
  0x21   : > { %1144 = vmatmul.msk.f32.gmra.mxu2 %vm475_vm1, %v516_v14  ;;  %1147 = vmatmul.msk.f32.gmra.mxu3 %vm475_vm1, %v519_v15 }
  0x23   : > { %1142 = vmatmul.msk.f32.gmra.mxu1 %vm475_vm1, %v470_v16 }
  0x29   : > { %1145 = vmatmul.msk.f32.gmra.mxu2 %vm475_vm1, %v517_v17  ;;  %1148 = vmatmul.msk.f32.gmra.mxu3 %vm475_vm1, %v520_v18 }
  0x92   : > { %v463_v20 = vpop.f32.mrf.mxu0 }
  0x93   : > { %v464_v21 = vadd.f32 %v1240_v19, %v463_v20 }
  0x98   : > { %v499_v24 = vpop.f32.mrf.mxu1 }
  0x99   : > { %v505_v25 = vadd.f32 %v499_v24, %v464_v21 }
  0x9a   : > { %v466_v31 = vpop.f32.mrf.mxu0 }
  0x9b   : > { %v511_v30 = vadd.f32 %v1241_v23, %v505_v25  ;;  %v467_v32 = vadd.f32 %v1240_v19, %v466_v31 }
  0x9c   : > { %v564_v26 = vpop.f32.mrf.mxu2  ;;  %v573_v27 = vpop.f32.mrf.mxu3 }
  0x9d   : > { %v565_v28 = vadd.f32 %v1239_v22, %v564_v26  ;;  %v574_v29 = vadd.f32 %v1239_v22, %v573_v27  ;;  %513 = vst.msk [vmem:[#allocation2] sm:$0xff] %vm475_vm1, %v511_v30 }
  0x9f   : > { %582 = vst.msk [vmem:[#allocation3] sm:$0xff] %vm475_vm1, %v565_v28 }
  0xa0   : > { %585 = vst.msk [vmem:[#allocation3 + $0x18] sm:$0xff] %vm475_vm1, %v574_v29  ;;  %v502_v33 = vpop.f32.mrf.mxu1 }
  0xa1   : > { %v506_v34 = vadd.f32 %v502_v33, %v467_v32 }
  0xa3   : > { %v512_v39 = vadd.f32 %v1241_v23, %v506_v34 }
  0xa4   : > { %v567_v35 = vpop.f32.mrf.mxu2  ;;  %v576_v36 = vpop.f32.mrf.mxu3 }
  0xa5   : > { %v568_v37 = vadd.f32 %v1239_v22, %v567_v35  ;;  %v577_v38 = vadd.f32 %v1239_v22, %v576_v36  ;;  %514 = vst.msk [vmem:[#allocation2 + $0x8] sm:$0xff] %vm475_vm1, %v512_v39 }
  0xa7   : > { %583 = vst.msk [vmem:[#allocation3 + $0x8] sm:$0xff] %vm475_vm1, %v568_v37 }
  0xa8   : > { %586 = vst.msk [vmem:[#allocation3 + $0x20] sm:$0xff] %vm475_vm1, %v577_v38 }
  0xac   : > { %v570_v40 = vpop.f32.mrf.mxu2  ;;  %v579_v41 = vpop.f32.mrf.mxu3 }
  0xad   : > { %v571_v42 = vadd.f32 %v1239_v22, %v570_v40  ;;  %v580_v43 = vadd.f32 %v1239_v22, %v579_v41 }
  0xaf   : > { %584 = vst.msk [vmem:[#allocation3 + $0x10] sm:$0xff] %vm475_vm1, %v571_v42 }
  0xb0   : > { %587 = vst.msk [vmem:[#allocation3 + $0x28] sm:$0xff] %vm475_vm1, %v580_v43 }
  0xb1 PF: > { %v591_v44 = vld [vmem:[%s1388_s14 + $0x18] sm:$0xff]  ;;  %v590_v45 = vld [vmem:[%s1388_s14 + $0x10] sm:$0xff]  ;;  %v589_v46 = vld [vmem:[%s1388_s14 + $0x8] sm:$0xff]  ;;  %vm628_vm2 = vcmask 261120   ;;  %vm962_vm9 = vcmask 392192   ;;  %p1203_p5 = scmp.ne.s32.totalorder %s1379_s26, 1 }
  0xb2   : > { %647 = vmatpush.msra.mxu0 %v591_v44  ;;  %1217 = vmatpush.msra.mxu1 %v591_v44  ;;  %v588_v47 = vld [vmem:[%s1388_s14] sm:$0xff]  ;;  %v1481_v49 = vld [vmem:[#allocation2 + $0x8] sm:$0xff]  ;;  %v595_v50 = vld [vmem:[%s1388_s14 + $0x38] sm:$0xff] }
  0xb3   : > { %v1479_v48 = vld [vmem:[#allocation2] sm:$0xff]  ;;  %v594_v51 = vld [vmem:[%s1388_s14 + $0x30] sm:$0xff]  ;;  %v593_v52 = vld [vmem:[%s1388_s14 + $0x28] sm:$0xff] }
  0xb4   : > { %648 = vmatpush.msra.mxu0 %v590_v45  ;;  %1218 = vmatpush.msra.mxu1 %v590_v45  ;;  %v592_v53 = vld [vmem:[%s1388_s14 + $0x20] sm:$0xff]  ;;  %v599_v54 = vld [vmem:[%s1388_s14 + $0x58] sm:$0xff]  ;;  %v598_v55 = vld [vmem:[%s1388_s14 + $0x50] sm:$0xff] }
  0xb5   : > { %719 = vmatpush.msra.mxu2 %v599_v54  ;;  %v597_v56 = vld [vmem:[%s1388_s14 + $0x48] sm:$0xff]  ;;  %v596_v57 = vld [vmem:[%s1388_s14 + $0x40] sm:$0xff]  ;;  %v1499_v58 = vld [vmem:[#allocation3] sm:$0xff] }
  0xb6   : > { %649 = vmatpush.msra.mxu0 %v589_v46  ;;  %1219 = vmatpush.msra.mxu1 %v589_v46  ;;  %v1503_v59 = vld [vmem:[#allocation3 + $0x8] sm:$0xff]  ;;  %v1507_v61 = vld [vmem:[#allocation3 + $0x10] sm:$0xff]  ;;  %v1511_v63 = vld [vmem:[#allocation3 + $0x18] sm:$0xff] }
  0xb7   : > { %720 = vmatpush.msra.mxu2 %v598_v55  ;;  %v1209_v4 = vld [vmem:[%s1617_s9] sm:$0xff]  ;;  %v1518_v5 = vld [vmem:[#allocation3 + $0x20] sm:$0xff]  ;;  %v1523_v6 = vld [vmem:[#allocation3 + $0x28] sm:$0xff] }
  0xb8   : > { %650 = vmatpush.msra.mxu0 %v588_v47  ;;  %1220 = vmatpush.msra.mxu1 %v588_v47  ;;  %v1210_v7 = vld [vmem:[%s1617_s9 + $0x8] sm:$0xff]  ;;  %v1211_v8 = vld [vmem:[%s1617_s9 + $0x10] sm:$0xff]  ;;  %v603_v9 = vld [vmem:[%s1388_s14 + $0x78] sm:$0xff] }
  0xb9   : > { %1149 = vmatmul.msk.f32.vlgmr.msra.gmra.mxu0 %vm628_vm2, %v1479_v48  ;;  %1150 = vmatmul.msk.f32.vlgmr.msra.gmra.mxu1 %vm628_vm2, %v1481_v49  ;;  %v602_v10 = vld [vmem:[%s1388_s14 + $0x70] sm:$0xff]  ;;  %v601_v11 = vld [vmem:[%s1388_s14 + $0x68] sm:$0xff]  ;;  %v600_v12 = vld [vmem:[%s1388_s14 + $0x60] sm:$0xff] }
  0xba   : > { %670 = vmatpush.msrb.mxu1 %v595_v50  ;;  %721 = vmatpush.msra.mxu2 %v597_v56  ;;  %v616_v14 = vld [vmem:[%s1388_s14 + $0xe0] sm:$0xff]  ;;  %v611_v47 = vld [vmem:[%s1388_s14 + $0xb8] sm:$0xff] }
  0xbb   : > { %870 = vmatpush.msrb.mxu0 %v603_v9  ;;  %v790_v16 = vperm.slane %v616_v14, 0 }
  0xbc   : > { %671 = vmatpush.msrb.mxu1 %v594_v51  ;;  %722 = vmatpush.msra.mxu2 %v596_v57 }
  0xbd   : > { %1153 = vmatmul.msk.f32.vlgmr.msra.gmra.mxu2 %vm628_vm2, %v1499_v58  ;;  %871 = vmatpush.msrb.mxu0 %v602_v10 }
  0xbe   : > { %672 = vmatpush.msrb.mxu1 %v593_v52 }
  0xbf   : > { %872 = vmatpush.msrb.mxu0 %v601_v11 }
  0xc0   : > { %673 = vmatpush.msrb.mxu1 %v592_v53 }
  0xc1   : > { %1151 = vmatmul.msk.f32.vlgmr.msrb.gmra.mxu1 %vm628_vm2, %v1479_v48  ;;  %873 = vmatpush.msrb.mxu0 %v600_v12 }
  0xc2   : > { %929 = vmatpush.msra.mxu1 %v611_v47 }
  0xc5   : > { %1154 = vmatmul.msk.f32.gmra.mxu2 %vm628_vm2, %v1503_v59 }
  0xc9   : > { %1152 = vmatmul.msk.f32.gmra.mxu1 %vm628_vm2, %v1481_v49 }
  0xcd   : > { %1155 = vmatmul.msk.f32.gmra.mxu2 %vm628_vm2, %v1507_v61 }
  0xd5   : > { %1156 = vmatmul.msk.f32.gmra.mxu2 %vm628_vm2, %v1511_v63 }
  0xdd   : > { %1157 = vmatmul.msk.f32.gmra.mxu2 %vm628_vm2, %v1518_v5 }
  0xe5   : > { %1158 = vmatmul.msk.f32.gmra.mxu2 %vm628_vm2, %v1523_v6 }
 0x136   : > { %v655_v60 = vpop.f32.mrf.mxu1  ;;  %v652_v2 = vpop.f32.mrf.mxu0 }
 0x137   : > { %v681_v3 = vpack.c.bf16 %v655_v60, %v652_v2 }
 0x13e   : > { %v675_v62 = vpop.f32.mrf.mxu1 }
 0x140   : > { %v724_v13 = vpop.f32.mrf.mxu2 }
 0x146   : > { %v678_v0 = vpop.f32.mrf.mxu1 }
 0x147   : > { %v682_v1 = vpack.c.bf16 %v678_v0, %v675_v62 }
 0x148   : > { %v727_v15 = vpop.f32.mrf.mxu2 }
 0x149   : > { %772 = vmatpush.bf16.msra.mxu3 %v682_v1 }
 0x14d   : > { %773 = vmatpush.bf16.msra.mxu3 %v681_v3 }
 0x150   : > { %1171 = vmatmul.msk.bf16.vlgmr.msra.gmra.mxu3 %vm628_vm2, %v1209_v4  ;;  %v730_v22 = vpop.f32.mrf.mxu2 }
 0x158   : > { %v733_v32 = vpop.f32.mrf.mxu2 }
 0x160   : > { %1172 = vmatmul.msk.bf16.gmra.mxu3 %vm628_vm2, %v1210_v7  ;;  %v736_v44 = vpop.f32.mrf.mxu2 }
 0x168   : > { %v739_v62 = vpop.f32.mrf.mxu2 }
 0x170   : > { %1173 = vmatmul.msk.bf16.gmra.mxu3 %vm628_vm2, %v1211_v8 }
 0x1d3   : > { %v775_v17 = vpop.f32.mrf.mxu3 }
 0x1d4   : > { %v776_v18 = vadd.f32 %v775_v17, %v724_v13 }
 0x1d6   : > { %v791_v19 = vadd.f32 %v790_v16, %v776_v18 }
 0x1d8   : > { %v803_v20 = vmul.f32 1.442695, %v791_v19  ;;  %vm797_vm3 = vcmp.gt.f32.partialorder %v791_v19, 0.0 }
 0x1da   : > { %1243 = vpow2.f32 %v803_v20  ;;  %v610_v20 = vld [vmem:[%s1388_s14 + $0xb0] sm:$0xff] }
 0x1db   : > { %v777_v21 = vpop.f32.mrf.mxu3  ;;  %930 = vmatpush.msra.mxu1 %v610_v20 }
 0x1dc   : > { %v778_v23 = vadd.f32 %v777_v21, %v727_v15  ;;  %v609_v21 = vld [vmem:[%s1388_s14 + $0xa8] sm:$0xff] }
 0x1dd   : > { %931 = vmatpush.msra.mxu1 %v609_v21 }
 0x1de   : > { %v792_v24 = vadd.f32 %v790_v16, %v778_v23  ;;  %v617_v23 = vld [vmem:[%s1388_s14 + $0xe8] sm:$0xff] }
 0x1e0   : > { %v1244_v25 = vpop.eup %1243  ;;  %v805_v26 = vmul.f32 1.442695, %v792_v24  ;;  %vm798_vm4 = vcmp.gt.f32.partialorder %v792_v24, 0.0 }
 0x1e1   : > { %v1174_v27 = vadd.f32 -1.0, %v1244_v25 }
 0x1e2   : > { %1245 = vpow2.f32 %v805_v26 }
 0x1e3   : > { %v821_v28 = vmul.f32 1.6732632, %v1174_v27  ;;  %v780_v29 = vpop.f32.mrf.mxu3 }
 0x1e4   : > { %v781_v30 = vadd.f32 %v780_v29, %v730_v22  ;;  %v608_v22 = vld [vmem:[%s1388_s14 + $0xa0] sm:$0xff] }
 0x1e5   : > { %v827_v31 = vsel %vm797_vm3, %v791_v19, %v821_v28  ;;  %932 = vmatpush.msra.mxu1 %v608_v22 }
 0x1e6   : > { %v833_v33 = vmul.f32 1.050701, %v827_v31  ;;  %v793_v34 = vadd.f32 %v790_v16, %v781_v30 }
 0x1e8   : > { %v1246_v35 = vpop.eup %1245  ;;  %v807_v36 = vmul.f32 1.442695, %v793_v34  ;;  %1180 = vmatmul.msk.f32.vlgmr.msrb.gmra.mxu0 %vm628_vm2, %v833_v33  ;;  %vm799_vm5 = vcmp.gt.f32.partialorder %v793_v34, 0.0 }
 0x1e9   : > { %v1175_v37 = vadd.f32 -1.0, %v1246_v35 }
 0x1ea   : > { %1247 = vpow2.f32 %v807_v36 }
 0x1eb   : > { %v782_v38 = vpop.f32.mrf.mxu3  ;;  %v822_v39 = vmul.f32 1.6732632, %v1175_v37 }
 0x1ec   : > { %v783_v40 = vadd.f32 %v782_v38, %v733_v32 }
 0x1ed   : > { %v828_v41 = vsel %vm798_vm4, %v792_v24, %v822_v39  ;;  %v839_v24 = vperm.slane %v617_v23, 0 }
 0x1ee   : > { %v794_v42 = vadd.f32 %v790_v16, %v783_v40  ;;  %v834_v43 = vmul.f32 1.050701, %v828_v41  ;;  %v607_v41 = vld [vmem:[%s1388_s14 + $0x98] sm:$0xff] }
 0x1ef   : > { %1006 = vmatpush.msrb.mxu3 %v607_v41 }
 0x1f0   : > { %v1248_v45 = vpop.eup %1247  ;;  %v809_v46 = vmul.f32 1.442695, %v794_v42  ;;  %1181 = vmatmul.msk.f32.gmra.mxu0 %vm628_vm2, %v834_v43  ;;  %vm800_vm6 = vcmp.gt.f32.partialorder %v794_v42, 0.0  ;;  %v605_v43 = vld [vmem:[%s1388_s14 + $0x88] sm:$0xff] }
 0x1f1   : > { %v1176_v50 = vadd.f32 -1.0, %v1248_v45  ;;  %v980_v45 = vld [vmem:[%s1619_s11] sm:$0xff] }
 0x1f2   : > { %1249 = vpow2.f32 %v809_v46  ;;  %v615_v46 = vld [vmem:[%s1388_s14 + $0xd8] sm:$0xff] }
 0x1f3   : > { %v785_v51 = vpop.f32.mrf.mxu3  ;;  %v823_v52 = vmul.f32 1.6732632, %v1176_v50  ;;  %1053 = vmatpush.msra.mxu0 %v615_v46  ;;  %v981_v50 = vld [vmem:[%s1619_s11 + $0x8] sm:$0xff] }
 0x1f4   : > { %v786_v53 = vadd.f32 %v785_v51, %v736_v44  ;;  %v604_v44 = vld [vmem:[%s1388_s14 + $0x80] sm:$0xff] }
 0x1f5   : > { %v829_v54 = vsel %vm799_vm5, %v793_v34, %v823_v52 }
 0x1f6   : > { %v795_v55 = vadd.f32 %v790_v16, %v786_v53  ;;  %v835_v56 = vmul.f32 1.050701, %v829_v54 }
 0x1f8   : > { %v1250_v57 = vpop.eup %1249  ;;  %v811_v60 = vmul.f32 1.442695, %v795_v55  ;;  %1182 = vmatmul.msk.f32.gmra.mxu0 %vm628_vm2, %v835_v56  ;;  %vm801_vm7 = vcmp.gt.f32.partialorder %v795_v55, 0.0  ;;  %v1212_v56 = vld [vmem:[%s1618_s10] sm:$0xff] }
 0x1f9   : > { %v1177_v0 = vadd.f32 -1.0, %v1250_v57  ;;  %v614_v57 = vld [vmem:[%s1388_s14 + $0xd0] sm:$0xff] }
 0x1fa   : > { %1251 = vpow2.f32 %v811_v60  ;;  %1054 = vmatpush.msra.mxu0 %v614_v57  ;;  %v613_v60 = vld [vmem:[%s1388_s14 + $0xc8] sm:$0xff] }
 0x1fb   : > { %v787_v1 = vpop.f32.mrf.mxu3  ;;  %v824_v2 = vmul.f32 1.6732632, %v1177_v0 }
 0x1fc   : > { %v788_v3 = vadd.f32 %v787_v1, %v739_v62  ;;  %1055 = vmatpush.msra.mxu0 %v613_v60  ;;  %v612_v62 = vld [vmem:[%s1388_s14 + $0xc0] sm:$0xff]  ;;  %v618_v1 = vld [vmem:[%s1388_s14 + $0xf0] sm:$0xff] }
 0x1fd   : > { %v830_v4 = vsel %vm800_vm6, %v794_v42, %v824_v2 }
 0x1fe   : > { %v796_v7 = vadd.f32 %v790_v16, %v788_v3  ;;  %v836_v8 = vmul.f32 1.050701, %v830_v4  ;;  %1056 = vmatpush.msra.mxu0 %v612_v62 }
 0x200   : > { %v1252_v9 = vpop.eup %1251  ;;  %v813_v10 = vmul.f32 1.442695, %v796_v7  ;;  %1183 = vmatmul.msk.f32.gmra.mxu0 %vm628_vm2, %v836_v8  ;;  %vm802_vm8 = vcmp.gt.f32.partialorder %v796_v7, 0.0 }
 0x201   : > { %v1178_v11 = vadd.f32 -1.0, %v1252_v9 }
 0x202   : > { %1253 = vpow2.f32 %v813_v10 }
 0x203   : > { %v825_v12 = vmul.f32 1.6732632, %v1178_v11 }
 0x205   : > { %v831_v13 = vsel %vm801_vm7, %v795_v55, %v825_v12 }
 0x206   : > { %v837_v14 = vmul.f32 1.050701, %v831_v13 }
 0x208   : > { %v1254_v15 = vpop.eup %1253  ;;  %1184 = vmatmul.msk.f32.gmra.mxu0 %vm628_vm2, %v837_v14 }
 0x209   : > { %v1179_v17 = vadd.f32 -1.0, %v1254_v15 }
 0x20b   : > { %v826_v16 = vmul.f32 1.6732632, %v1179_v17 }
 0x20d   : > { %v832_v18 = vsel %vm802_vm8, %v796_v7, %v826_v16  ;;  %v1017_v7 = vperm.slane %v618_v1, 0 }
 0x20e   : > { %v838_v19 = vmul.f32 1.050701, %v832_v18 }
 0x210   : > { %1185 = vmatmul.msk.f32.gmra.mxu0 %vm628_vm2, %v838_v19 }
 0x265   : > { %v875_v25 = vpop.f32.mrf.mxu0 }
 0x266   : > { %v876_v26 = vadd.f32 %v875_v25, %v839_v24 }
 0x268   : > { %v893_v27 = vadd.f32 %v876_v26, %v1499_v58 }
 0x26a   : > { %1068 = vst.msk [vmem:[#allocation3] sm:$0xff] %vm628_vm2, %v893_v27  ;;  %1186 = vmatmul.msk.f32.vlgmr.msra.gmra.mxu1 %vm628_vm2, %v893_v27 }
 0x26d   : > { %v878_v28 = vpop.f32.mrf.mxu0 }
 0x26e   : > { %v879_v29 = vadd.f32 %v878_v28, %v839_v24  ;;  %v619_v28 = vld [vmem:[%s1388_s14 + $0xf8] sm:$0xff] }
 0x270   : > { %v894_v30 = vadd.f32 %v879_v29, %v1503_v59  ;;  %v1034_v29 = vperm.slane %v619_v28, 0 }
 0x272   : > { %1069 = vst.msk [vmem:[#allocation3 + $0x8] sm:$0xff] %vm628_vm2, %v894_v30  ;;  %1187 = vmatmul.msk.f32.gmra.mxu1 %vm628_vm2, %v894_v30 }
 0x275   : > { %v881_v31 = vpop.f32.mrf.mxu0 }
 0x276   : > { %v882_v32 = vadd.f32 %v881_v31, %v839_v24 }
 0x278   : > { %v895_v33 = vadd.f32 %v882_v32, %v1507_v61 }
 0x27a   : > { %1070 = vst.msk [vmem:[#allocation3 + $0x10] sm:$0xff] %vm628_vm2, %v895_v33  ;;  %1188 = vmatmul.msk.f32.gmra.mxu1 %vm628_vm2, %v895_v33 }
 0x27d   : > { %v884_v58 = vpop.f32.mrf.mxu0 }
 0x27e   : > { %v885_v34 = vadd.f32 %v884_v58, %v839_v24 }
 0x280   : > { %v896_v35 = vadd.f32 %v885_v34, %v1511_v63 }
 0x282   : > { %1071 = vst.msk [vmem:[#allocation3 + $0x18] sm:$0xff] %vm628_vm2, %v896_v35  ;;  %1189 = vmatmul.msk.f32.gmra.mxu1 %vm628_vm2, %v896_v35 }
 0x285   : > { %v887_v59 = vpop.f32.mrf.mxu0 }
 0x286   : > { %v888_v36 = vadd.f32 %v887_v59, %v839_v24 }
 0x288   : > { %v897_v37 = vadd.f32 %v888_v36, %v1518_v5  ;;  %v606_v5 = vld [vmem:[%s1388_s14 + $0x90] sm:$0xff] }
 0x289   : > { %1007 = vmatpush.msrb.mxu3 %v606_v5 }
 0x28a   : > { %1072 = vst.msk [vmem:[#allocation3 + $0x20] sm:$0xff] %vm628_vm2, %v897_v37  ;;  %1190 = vmatmul.msk.f32.gmra.mxu1 %vm628_vm2, %v897_v37 }
 0x28b   : > { %1008 = vmatpush.msrb.mxu3 %v605_v43 }
 0x28d   : > { %v890_v61 = vpop.f32.mrf.mxu0  ;;  %1009 = vmatpush.msrb.mxu3 %v604_v44 }
 0x28e   : > { %v891_v38 = vadd.f32 %v890_v61, %v839_v24  ;;  %1197 = vmatmul.msk.f32.vlgmr.msrb.gmra.mxu3 %vm628_vm2, %v1479_v48 }
 0x290   : > { %v898_v39 = vadd.f32 %v891_v38, %v1523_v6  ;;  %v1299_v6 = vmov 0  }
 0x291   : > { %1242 = vset.pattern.permute.xlu0 %v1299_v6 }
 0x292   : > { %1073 = vst.msk [vmem:[#allocation3 + $0x28] sm:$0xff] %vm628_vm2, %v898_v39  ;;  %1191 = vmatmul.msk.f32.gmra.mxu1 %vm628_vm2, %v898_v39  ;;  %984 = vperm.xlu0 %1242, %v980_v45  }
 0x296   : > { %1198 = vmatmul.msk.f32.gmra.mxu3 %vm628_vm2, %v1481_v49 }
 0x29a   : > { %989 = vperm.xlu0 %1242, %v981_v50  }
 0x2e7   : > { %v934_v63 = vpop.f32.mrf.mxu1 }
 0x2ef   : > { %v937_v40 = vpop.f32.mrf.mxu1 }
 0x2f0   : > { %v952_v55 = vpack.c.bf16 %v937_v40, %v934_v63 }
 0x2f7   : > { %v940_v42 = vpop.f32.mrf.mxu1 }
 0x2ff   : > { %v943_v47 = vpop.f32.mrf.mxu1 }
 0x300   : > { %v953_v54 = vpack.c.bf16 %v943_v47, %v940_v42 }
 0x304   : > { %v985_v0 = vpop.permute.xlu0 %984 }
 0x307   : > { %v946_v51 = vpop.f32.mrf.mxu1 }
 0x30c   : > { %v990_v11 = vpop.permute.xlu0 %989 }
 0x30f   : > { %v949_v52 = vpop.f32.mrf.mxu1 }
 0x310   : > { %v954_v53 = vpack.c.bf16 %v949_v52, %v946_v51 }
 0x311   : > { %v1011_v2 = vpop.f32.mrf.mxu3 }
 0x312   : > { %971 = vmatpush.bf16.msrb.mxu2 %v954_v53 }
 0x316   : > { %972 = vmatpush.bf16.msrb.mxu2 %v953_v54 }
 0x319   : > { %v1014_v13 = vpop.f32.mrf.mxu3 }
 0x31a   : > { %973 = vmatpush.bf16.msrb.mxu2 %v952_v55 }
 0x31d   : > { %1196 = vmatmul.msk.bf16.vlgmr.msrb.gmra.mxu2 %vm962_vm9, %v1212_v56 }
 0x3a0   : > { %v975_v3 = vpop.f32.mrf.mxu2 }
 0x3a1   : > { %v992_v4 = vmul.f32 %v985_v0, %v975_v3 }
 0x3a3   : > { %v1012_v8 = vadd.f32 %v1011_v2, %v992_v4 }
 0x3a5   : > { %v1018_v9 = vadd.f32 %v1017_v7, %v1012_v8 }
 0x3a7   : > { %v1022_v10 = vmul.f32 1.442695, %v1018_v9  ;;  %vm1020_vm10 = vcmp.gt.f32.partialorder %v1018_v9, 0.0 }
 0x3a8   : > { %v977_v12 = vpop.f32.mrf.mxu2 }
 0x3a9   : > { %1255 = vpow2.f32 %v1022_v10  ;;  %v993_v14 = vmul.f32 %v990_v11, %v977_v12 }
 0x3ab   : > { %v1015_v15 = vadd.f32 %v1014_v13, %v993_v14 }
 0x3ad   : > { %v1019_v17 = vadd.f32 %v1017_v7, %v1015_v15 }
 0x3af   : > { %v1256_v16 = vpop.eup %1255  ;;  %v1024_v18 = vmul.f32 1.442695, %v1019_v17  ;;  %vm1021_vm11 = vcmp.gt.f32.partialorder %v1019_v17, 0.0 }
 0x3b0   : > { %v1199_v19 = vadd.f32 -1.0, %v1256_v16 }
 0x3b1   : > { %1257 = vpow2.f32 %v1024_v18 }
 0x3b2   : > { %v1028_v20 = vmul.f32 1.6732632, %v1199_v19 }
 0x3b4   : > { %v1030_v21 = vsel %vm1020_vm10, %v1018_v9, %v1028_v20 }
 0x3b5   : > { %v1032_v22 = vmul.f32 1.050701, %v1030_v21 }
 0x3b7   : > { %v1258_v23 = vpop.eup %1257  ;;  %1201 = vmatmul.msk.f32.vlgmr.msra.gmra.mxu0 %vm628_vm2, %v1032_v22 }
 0x3b8   : > { %v1200_v24 = vadd.f32 -1.0, %v1258_v23 }
 0x3ba   : > { %v1029_v25 = vmul.f32 1.6732632, %v1200_v24 }
 0x3bc   : > { %v1031_v26 = vsel %vm1021_vm11, %v1019_v17, %v1029_v25 }
 0x3bd   : > { %v1033_v27 = vmul.f32 1.050701, %v1031_v26 }
 0x3bf   : > { %1202 = vmatmul.msk.f32.gmra.mxu0 %vm628_vm2, %v1033_v27 }
 0x434   : > { %v1058_v30 = vpop.f32.mrf.mxu0 }
 0x435   : > { %v1059_v31 = vadd.f32 %v1058_v30, %v1034_v29 }
 0x437   : > { %v1064_v32 = vadd.f32 %v1059_v31, %v1479_v48 }
 0x439   : > { %1066 = vst.msk [vmem:[#allocation2] sm:$0xff] %vm628_vm2, %v1064_v32 }
 0x43c   : > { %v1061_v33 = vpop.f32.mrf.mxu0 }
 0x43d   : > { %v1062_v58 = vadd.f32 %v1061_v33, %v1034_v29  ;;  %1077 = sbr.rel (%p1203_p5) target bundleno = 1098 (0x44a), region = 80 }
 0x43f   : > { %v1065_v34 = vadd.f32 %v1062_v58, %v1481_v49 }
 0x441   : > { %1067 = vst.msk [vmem:[#allocation2 + $0x8] sm:$0xff] %vm628_vm2, %v1065_v34 }
 0x442   : > { %v1078_v35 = vld [vmem:[#allocation2] sm:$0xff] }
 0x443   : > { %1080 = vst.msk [vmem:[#allocation4] sm:$0xff] %vm628_vm2, %v1078_v35 }
 0x448   : > { %v1079_v59 = vld [vmem:[#allocation2 + $0x8] sm:$0xff] }
 0x449   : > { %1081 = vst.msk [vmem:[#allocation4 + $0x8] sm:$0xff] %vm628_vm2, %v1079_v59 }
 0x44a PF: > { %p1225_p6 = scmp.eq.s32.totalorder %s1379_s26, 1  ;;  %s1300_s14 = smov [#allocation4]  }
 0x44b   : > { %s1087_s15 = sshll.u32 %s1300_s14, 4  ;;  %s1089_s18 = sshll.u32 %s1621_s13, 4  ;;  %s1088_s15 = int_to_ptr.vmem [resolvable:$true] %s1087_s15  ;;  %s1090_s18 = int_to_ptr.hbm [resolvable:$true] %s1089_s18 }
 0x44c   : > { %s1301_s19 = smov 128   ;;  %s1302_s20 = smov 8  }
 0x44d   : > { %1222 = dma.vmem_to_hbm [thread:$0]  (%p1225_p6), %s1088_s15, 256, %s1090_s18, [#allocation5], %s1301_s19, %s1301_s19, %s1302_s20  }
 0x44e   : > { %1292 = dma.done.wait (%p1225_p6), [#allocation5], 256  }
 0x44f   : > { %1294 = vsyncadd (%p1225_p6), [#allocation5], 4294967040 }
 0x450 PF: > { %s24_s25 = sadd.s32 1, %s1297_s25  }
 0x451   : > { %p21_p7 = scmp.ge.s32.totalorder %s24_s25, 4  }
 0x453   :  { %23 = sbr.rel (!%p21_p7) target bundleno = 1 (0x1), region = 107 }
 0x458   :  { %1106 = vsyncpa [#allocation5], 1 }
 0x459   :  { %1108 = vsyncpa [#allocation5 + $0x1], 1 }

</bundles_post_ra>
